<compile_context>
chip_gen: v7x
topology: tpu7x:2x2x1
jax: 0.10.0
libtpu: 0.0.40
codegen_flags: <defaults>
</compile_context>

<pallas_src>
import jax
import jax.numpy as jnp
from jax.experimental import pallas as pl
from jax.experimental.pallas import tpu as pltpu


def make_senngc_kernel(num_layers: int):
    """num_layers = num_hidden_layers + 1 Linear layers per coeff net."""

    def kernel(*refs):
        # refs = [x_flat, x_tiled, group_sum, w0, b0, w1, b1, ..., preds, coeffs]
        x_ref = refs[0]                               # (BS, K*P)        lane-dense
        xt_ref = refs[1]                              # (BS, K*P*P)      pre-tiled x
        gs_ref = refs[2]                              # (K*P*P, P)       block group-sum
        w_refs = refs[3:3 + 2 * num_layers:2]         # block-diag (K*din, K*dout)
        b_refs = refs[4:4 + 2 * num_layers:2]         # (1, K*dout)
        preds_ref = refs[3 + 2 * num_layers]          # (BS, P)
        coeffs_ref = refs[4 + 2 * num_layers]         # (BS, K*P*P)

        # Fused MLP over ALL lags at once via block-diagonal weights.
        h = x_ref[...]                                # (BS, K*P)
        for li in range(num_layers):
            h = jnp.dot(h, w_refs[li][...],
                        preferred_element_type=jnp.float32) + b_refs[li][...]
            if li < num_layers - 1:
                h = jnp.maximum(h, 0.0)               # ReLU
            else:
                h = jnp.tanh(h)                       # Tanh on the final layer

        # h is already the lane-dense, k-major coeff slab: single store.
        coeffs_ref[...] = h                           # (BS, K*P*P)

        # preds[b, i] = sum_{k,j} coeffs[b,k,i,j] * x[b,k,j]
        # = (coeffs_slab * x_tiled) @ group_sum  -- one VPU mul + one matmul.
        preds_ref[...] = jnp.dot(h * xt_ref[...], gs_ref[...],
                                 preferred_element_type=jnp.float32)

    return kernel


def _block_diag(w):
    """(K, din, dout) per-lag weights -> (K*din, K*dout) block-diagonal, k-major."""
    k, din, dout = w.shape
    eye = jnp.eye(k, dtype=w.dtype)
    return jnp.einsum("krc,kl->krlc", w, eye).reshape(k * din, k * dout)


def init_params(key, num_vars, order, hidden, num_hidden_layers):
    """Deterministic synthetic init (xavier-normal weights, bias = 0.1)."""
    num_layers = num_hidden_layers + 1
    dims_in = [num_vars] + [hidden] * (num_layers - 1)
    dims_out = [hidden] * (num_layers - 1) + [num_vars ** 2]
    weights, biases = [], []
    for li in range(num_layers):
        din, dout = dims_in[li], dims_out[li]
        per_k = []
        for _ in range(order):
            key, sub = jax.random.split(key)
            std = (2.0 / (din + dout)) ** 0.5
            per_k.append(std * jax.random.normal(sub, (din, dout), jnp.float32))
        weights.append(jnp.stack(per_k, axis=0))                     # (K, din, dout)
        biases.append(jnp.full((order, 1, dout), 0.1, jnp.float32))  # (K, 1, dout)
    return {"weights": weights, "biases": biases}


@jax.jit
def senngc_forward(x, params):
    """x: (BS, K, P) float32 -> (preds (BS, P), coeffs (BS, K, P, P))."""
    bs, order, p = x.shape
    num_layers = len(params["weights"])
    pp = p * p

    # Lane-dense inputs (free reshapes / tiny broadcast in the wrapper).
    x_flat = x.reshape(bs, order * p)                                      # (BS, K*P)
    x_tiled = jnp.broadcast_to(x[:, :, None, :],
                               (bs, order, p, p)).reshape(bs, order * pp)  # (BS, K*P*P)

    # Compile-time constant block group-sum: gs[m, i] = 1 iff (m // P) % P == i,
    # m = k*P*P + i*P + j.  Built once here (constant-folded by XLA), not in-kernel.
    m_ids = jax.lax.broadcasted_iota(jnp.int32, (order * pp, p), 0)
    i_ids = jax.lax.broadcasted_iota(jnp.int32, (order * pp, p), 1)
    group_sum = (((m_ids // p) % p) == i_ids).astype(jnp.float32)          # (K*P*P, P)

    # Block-diagonal weight packing (k-major blocks -> matches coeff reshape).
    flat_inputs = [x_flat, x_tiled, group_sum]
    for w, b in zip(params["weights"], params["biases"]):
        flat_inputs += [_block_diag(w), b.reshape(1, -1)]

    # No grid: one invocation, every operand is a full-array resident VMEM ref.
    vmem = pl.BlockSpec(memory_space=pltpu.MemorySpace.VMEM)
    out_shape = (
        jax.ShapeDtypeStruct((bs, p), jnp.float32),           # preds
        jax.ShapeDtypeStruct((bs, order * pp), jnp.float32),  # coeffs, lane-dense
    )

    preds, coeffs_flat = pl.pallas_call(
        make_senngc_kernel(num_layers),
        out_shape=out_shape,
        in_specs=[vmem] * len(flat_inputs),
        out_specs=(vmem, vmem),
    )(*flat_inputs)

    # Direct reshape -- no XLA transpose / extra HBM round trip.
    coeffs = coeffs_flat.reshape(bs, order, p, p)
    return preds, coeffs


def senngc_reference(x, params):
    """Pure-JAX reference mirroring the PyTorch forward."""
    bs, order, p = x.shape
    num_layers = len(params["weights"])
    preds = jnp.zeros((bs, p), jnp.float32)
    coeffs = []
    for k in range(order):
        h = x[:, k, :]
        for li in range(num_layers):
            h = h @ params["weights"][li][k] + params["biases"][li][k][0]
            h = jnp.maximum(h, 0.0) if li < num_layers - 1 else jnp.tanh(h)
        ck = h.reshape(bs, p, p)
        coeffs.append(ck)
        preds = preds + jnp.einsum("bij,bj->bi", ck, x[:, k, :])
    return preds, jnp.stack(coeffs, axis=1)


if __name__ == "__main__":
    # Small shapes consistent with the module: BS x K x P, hidden MLP size H.
    # As in the PyTorch __init__, coeff nets only exist for num_hidden_layers > 1.
    BS, ORDER, NUM_VARS, HIDDEN, NUM_HIDDEN_LAYERS = 8, 3, 4, 32, 2

    key = jax.random.PRNGKey(0)
    kx, kp = jax.random.split(key)
    x = jax.random.normal(kx, (BS, ORDER, NUM_VARS), jnp.float32)
    params = init_params(kp, NUM_VARS, ORDER, HIDDEN, NUM_HIDDEN_LAYERS)

    preds, coeffs = senngc_forward(x, params)
    jax.block_until_ready((preds, coeffs))

    preds_ref, coeffs_ref = senngc_reference(x, params)
    assert preds.shape == (BS, NUM_VARS)
    assert coeffs.shape == (BS, ORDER, NUM_VARS, NUM_VARS)
    assert jnp.allclose(preds, preds_ref, atol=2e-5, rtol=2e-5)
    assert jnp.allclose(coeffs, coeffs_ref, atol=2e-5, rtol=2e-5)

    print("KERNEL_OK")
</pallas_src>

<mosaic_0001>
module attributes {stable_mosaic.version = 11 : i64} {
  func.func @kernel(%arg0: memref<8x12xf32, #tpu.memory_space<vmem>>, %arg1: memref<8x48xf32, #tpu.memory_space<vmem>>, %arg2: memref<48x4xf32, #tpu.memory_space<vmem>>, %arg3: memref<12x96xf32, #tpu.memory_space<vmem>>, %arg4: memref<1x96xf32, #tpu.memory_space<vmem>>, %arg5: memref<96x96xf32, #tpu.memory_space<vmem>>, %arg6: memref<1x96xf32, #tpu.memory_space<vmem>>, %arg7: memref<96x48xf32, #tpu.memory_space<vmem>>, %arg8: memref<1x48xf32, #tpu.memory_space<vmem>>, %arg9: memref<8x4xf32, #tpu.memory_space<vmem>>, %arg10: memref<8x48xf32, #tpu.memory_space<vmem>>) attributes {dimension_semantics = [], scalar_prefetch = 0 : i64, scratch_operands = 0 : i64, tpu.core_type = #tpu.core_type<tc>} {
    %c0 = arith.constant 0 : index
    %c0_0 = arith.constant 0 : index
    %0 = vector.load %arg0[%c0, %c0_0] : memref<8x12xf32, #tpu.memory_space<vmem>>, vector<8x12xf32>
    %c0_1 = arith.constant 0 : index
    %c0_2 = arith.constant 0 : index
    %1 = vector.load %arg3[%c0_1, %c0_2] : memref<12x96xf32, #tpu.memory_space<vmem>>, vector<12x96xf32>
    %cst = arith.constant dense<0.000000e+00> : vector<8x96xf32>
    %2 = tpu.matmul %0, %1, %cst {dimension_numbers = #tpu.dot_dimension_numbers<[1], [0], [0], [1], [0, 0, 1, 1], [], []>} : vector<8x12xf32>, vector<12x96xf32>, vector<8x96xf32> -> vector<8x96xf32>
    %c0_3 = arith.constant 0 : index
    %c0_4 = arith.constant 0 : index
    %3 = vector.load %arg4[%c0_3, %c0_4] : memref<1x96xf32, #tpu.memory_space<vmem>>, vector<1x96xf32>
    %4 = vector.broadcast %3 : vector<1x96xf32> to vector<8x96xf32>
    %5 = arith.addf %2, %4 : vector<8x96xf32>
    %cst_5 = arith.constant 0.000000e+00 : f32
    %6 = vector.broadcast %cst_5 : f32 to vector<8x96xf32>
    %7 = arith.maximumf %5, %6 : vector<8x96xf32>
    %c0_6 = arith.constant 0 : index
    %c0_7 = arith.constant 0 : index
    %8 = vector.load %arg5[%c0_6, %c0_7] : memref<96x96xf32, #tpu.memory_space<vmem>>, vector<96x96xf32>
    %cst_8 = arith.constant dense<0.000000e+00> : vector<8x96xf32>
    %9 = tpu.matmul %7, %8, %cst_8 {dimension_numbers = #tpu.dot_dimension_numbers<[1], [0], [0], [1], [0, 0, 1, 1], [], []>} : vector<8x96xf32>, vector<96x96xf32>, vector<8x96xf32> -> vector<8x96xf32>
    %c0_9 = arith.constant 0 : index
    %c0_10 = arith.constant 0 : index
    %10 = vector.load %arg6[%c0_9, %c0_10] : memref<1x96xf32, #tpu.memory_space<vmem>>, vector<1x96xf32>
    %11 = vector.broadcast %10 : vector<1x96xf32> to vector<8x96xf32>
    %12 = arith.addf %9, %11 : vector<8x96xf32>
    %cst_11 = arith.constant 0.000000e+00 : f32
    %13 = vector.broadcast %cst_11 : f32 to vector<8x96xf32>
    %14 = arith.maximumf %12, %13 : vector<8x96xf32>
    %c0_12 = arith.constant 0 : index
    %c0_13 = arith.constant 0 : index
    %15 = vector.load %arg7[%c0_12, %c0_13] : memref<96x48xf32, #tpu.memory_space<vmem>>, vector<96x48xf32>
    %cst_14 = arith.constant dense<0.000000e+00> : vector<8x48xf32>
    %16 = tpu.matmul %14, %15, %cst_14 {dimension_numbers = #tpu.dot_dimension_numbers<[1], [0], [0], [1], [0, 0, 1, 1], [], []>} : vector<8x96xf32>, vector<96x48xf32>, vector<8x48xf32> -> vector<8x48xf32>
    %c0_15 = arith.constant 0 : index
    %c0_16 = arith.constant 0 : index
    %17 = vector.load %arg8[%c0_15, %c0_16] : memref<1x48xf32, #tpu.memory_space<vmem>>, vector<1x48xf32>
    %18 = vector.broadcast %17 : vector<1x48xf32> to vector<8x48xf32>
    %19 = arith.addf %16, %18 : vector<8x48xf32>
    %20 = math.tanh %19 : vector<8x48xf32>
    %c0_17 = arith.constant 0 : index
    %c0_18 = arith.constant 0 : index
    %21 = vector.load %arg10[%c0_17, %c0_18] : memref<8x48xf32, #tpu.memory_space<vmem>>, vector<8x48xf32>
    tpu.vector_store %arg10[%c0_17, %c0_18], %20 {strides = array<i32>} : memref<8x48xf32, #tpu.memory_space<vmem>>, vector<8x48xf32>,
    %c0_19 = arith.constant 0 : index
    %c0_20 = arith.constant 0 : index
    %22 = vector.load %arg1[%c0_19, %c0_20] : memref<8x48xf32, #tpu.memory_space<vmem>>, vector<8x48xf32>
    %23 = arith.mulf %20, %22 : vector<8x48xf32>
    %c0_21 = arith.constant 0 : index
    %c0_22 = arith.constant 0 : index
    %24 = vector.load %arg2[%c0_21, %c0_22] : memref<48x4xf32, #tpu.memory_space<vmem>>, vector<48x4xf32>
    %cst_23 = arith.constant dense<0.000000e+00> : vector<8x4xf32>
    %25 = tpu.matmul %23, %24, %cst_23 {dimension_numbers = #tpu.dot_dimension_numbers<[1], [0], [0], [1], [0, 0, 1, 1], [], []>} : vector<8x48xf32>, vector<48x4xf32>, vector<8x4xf32> -> vector<8x4xf32>
    %c0_24 = arith.constant 0 : index
    %c0_25 = arith.constant 0 : index
    %26 = vector.load %arg9[%c0_24, %c0_25] : memref<8x4xf32, #tpu.memory_space<vmem>>, vector<8x4xf32>
    tpu.vector_store %arg9[%c0_24, %c0_25], %25 {strides = array<i32>} : memref<8x4xf32, #tpu.memory_space<vmem>>, vector<8x4xf32>,
    return
  }
}

</mosaic_0001>

<bundles_post_ra>
// kernel: senngc_forward.1
= control target key start
LH: loop header
LB: loop body
LE: loop exit
PB: predicated region body
PF: predicated region fallthrough
CT: control target
= control target key end

     0   :  { %vm48_vm0 = vcmask 1043456   ;;  %v578_v0 = vmov 0.0|0.0   ;;  %vm579_vm1 = vmmov 1   ;;  %vm580_vm3 = vmmov 0   ;;  %s778_s3 = inlined_call_operand.vmem [shape: f32[12,96], index: 3, kind: input, shape index: {}]   ;;  %s779_s5 = inlined_call_operand.vmem [shape: f32[96,96], index: 5, kind: input, shape index: {}]   ;;  %s780_s0 = inlined_call_operand.vmem [shape: f32[8,12], index: 0, kind: input, shape index: {}]   ;;  %s781_s7 = inlined_call_operand.vmem [shape: f32[96,48], index: 7, kind: input, shape index: {}]   ;;  %s782_s4 = inlined_call_operand.vmem [shape: f32[1,96], index: 4, kind: input, shape index: {}]   ;;  %s783_s6 = inlined_call_operand.vmem [shape: f32[1,96], index: 6, kind: input, shape index: {}]   ;;  %s784_s2 = inlined_call_operand.vmem [shape: f32[48,4], index: 2, kind: input, shape index: {}]   ;;  %s785_s8 = inlined_call_operand.vmem [shape: f32[1,48], index: 8, kind: input, shape index: {}]   ;;  %s786_s1 = inlined_call_operand.vmem [shape: f32[8,48], index: 1, kind: input, shape index: {}]   ;;  %s787_s10 = inlined_call_operand.vmem [shape: f32[8,48], index: 10, kind: output, shape index: {1}]   ;;  %s788_s9 = inlined_call_operand.vmem [shape: f32[8,4], index: 9, kind: output, shape index: {0}]  }
   0x1   :  { %523 = vmatprep.subr.bf16.mxu0 %v578_v0  ;;  %v35_v1 = vld [vmem:[%s778_s3] sm:$0xff]  ;;  %v36_v2 = vld [vmem:[%s778_s3 + $0x8] sm:$0xf]  ;;  %vm525_vm2 = vmpackc.low %vm48_vm0, %vm579_vm1  ;;  %527 = vmatprep.subr.bf16.mxu1 %v578_v0  ;;  %v581_v4 = vmov 0.0   ;;  %vm44_vm4 = vcmask 97280   ;;  %vm142_vm5 = vcmask 785408  }
   0x2   :  { %v524_v3 = vpack.c.bf16 %v36_v2, %v35_v1  ;;  %451 = vmatprep.mubr.msk.f32.mxu0 %vm580_vm3, %v581_v4  ;;  %v123_v5 = vld [vmem:[%s779_s5] sm:$0xff]  ;;  %v124_v6 = vld [vmem:[%s779_s5 + $0x8] sm:$0xff]  ;;  %478 = vmatprep.mubr.msk.f32.mxu1 %vm580_vm3, %v581_v4  ;;  %v125_v8 = vld [vmem:[%s779_s5 + $0x10] sm:$0xff]  ;;  %vm310_vm6 = vcmask 392192   ;;  %vm393_vm7 = vcmask 31744  }
   0x3   :  { %v528_v7 = vpack.c.bf16 %v124_v6, %v123_v5  ;;  %v126_v9 = vld [vmem:[%s779_s5 + $0x18] sm:$0xff]  ;;  %v34_v10 = vld [vmem:[%s780_s0] sm:$0xff]  ;;  %v128_v13 = vld [vmem:[%s779_s5 + $0x28] sm:$0xff] }
   0x4   :  { %526 = vmatpush3.bf16.msk.msra.mxu0 %vm525_vm2, %v524_v3  ;;  %v531_v11 = vpack.c.bf16 %v126_v9, %v125_v8  ;;  %v127_v12 = vld [vmem:[%s779_s5 + $0x20] sm:$0xff]  ;;  %v129_v15 = vld [vmem:[%s779_s5 + $0x30] sm:$0xff]  ;;  %v130_v16 = vld [vmem:[%s779_s5 + $0x38] sm:$0xff] }
   0x5   :  { %529 = vmatpush3.bf16.msra.mxu1 %v528_v7  ;;  %545 = vmatprep.subr.bf16.mxu0 %v578_v0  ;;  %v534_v14 = vpack.c.bf16 %v128_v13, %v127_v12  ;;  %v537_v17 = vpack.c.bf16 %v130_v16, %v129_v15  ;;  %v131_v18 = vld [vmem:[%s779_s5 + $0x40] sm:$0xff]  ;;  %v132_v19 = vld [vmem:[%s779_s5 + $0x48] sm:$0xff]  ;;  %v133_v21 = vld [vmem:[%s779_s5 + $0x50] sm:$0xff] }
   0x6   :  { %530 = vmatprep.subr.bf16.mxu1 %v578_v0  ;;  %v540_v20 = vpack.c.bf16 %v132_v19, %v131_v18  ;;  %v134_v22 = vld [vmem:[%s779_s5 + $0x58] sm:$0xff]  ;;  %v217_v24 = vld [vmem:[%s781_s7] sm:$0xff]  ;;  %v218_v25 = vld [vmem:[%s781_s7 + $0x8] sm:$0xff] }
   0x7   :  { %452 = vmatmul.mubr.msk.f32.vlgmr.msra.gmra.mrb[0].mxu0 %vm44_vm4, %v34_v10  ;;  %v543_v23 = vpack.c.bf16 %v134_v22, %v133_v21  ;;  %v219_v26 = vld [vmem:[%s781_s7 + $0x10] sm:$0xff]  ;;  %v546_v27 = vpack.c.bf16 %v218_v25, %v217_v24  ;;  %v220_v28 = vld [vmem:[%s781_s7 + $0x18] sm:$0xff]  ;;  %v221_v30 = vld [vmem:[%s781_s7 + $0x20] sm:$0xff] }
   0x8   :  { %505 = vmatprep.mubr.msk.f32.mxu0 %vm580_vm3, %v581_v4  ;;  %v549_v29 = vpack.c.bf16 %v220_v28, %v219_v26  ;;  %v222_v31 = vld [vmem:[%s781_s7 + $0x28] sm:$0xff]  ;;  %v223_v33 = vld [vmem:[%s781_s7 + $0x30] sm:$0xff]  ;;  %v224_v34 = vld [vmem:[%s781_s7 + $0x38] sm:$0xff] }
   0x9   :  { %532 = vmatpush3.bf16.msra.mxu1 %v531_v11  ;;  %547 = vmatpush3.bf16.msra.mxu0 %v546_v27  ;;  %v552_v32 = vpack.c.bf16 %v222_v31, %v221_v30  ;;  %v555_v35 = vpack.c.bf16 %v224_v34, %v223_v33  ;;  %v225_v36 = vld [vmem:[%s781_s7 + $0x40] sm:$0xff]  ;;  %v226_v37 = vld [vmem:[%s781_s7 + $0x48] sm:$0xff]  ;;  %v227_v44 = vld [vmem:[%s781_s7 + $0x50] sm:$0xff] }
   0xa   :  { %533 = vmatprep.subr.bf16.mxu1 %v578_v0  ;;  %548 = vmatprep.subr.bf16.mxu0 %v578_v0  ;;  %v558_v38 = vpack.c.bf16 %v226_v37, %v225_v36  ;;  %v403_v39 = vld [vmem:[%s782_s4] ss:$0 sm:$0xff]  ;;  %v228_v45 = vld [vmem:[%s781_s7 + $0x58] sm:$0xff]  ;;  %v315_v53 = vld [vmem:[%s784_s2 + $0x8] sm:$0xff] }
   0xb   :  { %v561_v46 = vpack.c.bf16 %v228_v45, %v227_v44  ;;  %v406_v47 = vld [vmem:[%s783_s6] ss:$0 sm:$0xff]  ;;  %v316_v55 = vld [vmem:[%s784_s2 + $0x10] sm:$0xff]  ;;  %v317_v56 = vld [vmem:[%s784_s2 + $0x18] sm:$0xff] }
   0xc   :  { %v314_v52 = vld [vmem:[%s784_s2] sm:$0xff]  ;;  %v567_v57 = vpack.c.bf16 %v317_v56, %v316_v55  ;;  %v319_v59 = vld [vmem:[%s784_s2 + $0x28] sm:$0xff] }
   0xd   :  { %535 = vmatpush3.bf16.msra.mxu1 %v534_v14  ;;  %550 = vmatpush3.bf16.msra.mxu0 %v549_v29  ;;  %v564_v54 = vpack.c.bf16 %v315_v53, %v314_v52  ;;  %v318_v58 = vld [vmem:[%s784_s2 + $0x20] sm:$0xff] }
   0xe   :  { %536 = vmatprep.subr.bf16.mxu1 %v578_v0  ;;  %551 = vmatprep.subr.bf16.mxu0 %v578_v0  ;;  %v570_v60 = vpack.c.bf16 %v319_v59, %v318_v58  ;;  %v408_v61 = vld [vmem:[%s785_s8] ss:$0 sm:$0xff] }
   0xf   :  { %v312_v2 = vld [vmem:[%s786_s1] sm:$0xff] }
  0x11   :  { %538 = vmatpush3.bf16.msra.mxu1 %v537_v17  ;;  %553 = vmatpush3.bf16.msra.mxu0 %v552_v32 }
  0x12   :  { %539 = vmatprep.subr.bf16.mxu1 %v578_v0  ;;  %554 = vmatprep.subr.bf16.mxu0 %v578_v0 }
  0x15   :  { %541 = vmatpush3.bf16.msra.mxu1 %v540_v20  ;;  %556 = vmatpush3.bf16.msra.mxu0 %v555_v35 }
  0x16   :  { %542 = vmatprep.subr.bf16.mxu1 %v578_v0  ;;  %557 = vmatprep.subr.bf16.mxu0 %v578_v0 }
  0x19   :  { %544 = vmatpush3.bf16.msra.mxu1 %v543_v23  ;;  %559 = vmatpush3.bf16.msra.mxu0 %v558_v38 }
  0x1a   :  { %563 = vmatprep.subr.bf16.mxu1 %v578_v0  ;;  %560 = vmatprep.subr.bf16.mxu0 %v578_v0 }
  0x1d   :  { %562 = vmatpush3.bf16.msra.mxu0 %v561_v46 }
  0xda   :  { %v118_v40 = vpop.f32.mrb[0].mxu0 }
  0xdb   :  { %v119_v41 = vadd.f32 %v403_v39, %v118_v40  ;;  %v453_v42 = vpop.f32.mrb[1].mxu0 }
  0xdd   :  { %v122_v43 = vmax.f32 %v119_v41, 0.0 }
  0xdf   :  { %479 = vmatmul.mubr.msk.f32.vlgmr.msra.gmra.mrb[0].mxu1 %vm142_vm5, %v122_v43 }
  0xe0   :  { %520 = vmatprep.mubr.msk.f32.mxu1 %vm580_vm3, %v581_v4  ;;  %565 = vmatpush3.bf16.msra.mxu1 %v564_v54 }
  0xe1   :  { %566 = vmatprep.subr.bf16.mxu1 %v578_v0 }
  0xe4   :  { %568 = vmatpush3.bf16.msra.mxu1 %v567_v57 }
  0xe5   :  { %569 = vmatprep.subr.bf16.mxu1 %v578_v0 }
  0xe8   :  { %571 = vmatpush3.bf16.msra.mxu1 %v570_v60 }
 0x1b2   :  { %v212_v48 = vpop.f32.mrb[0].mxu1 }
 0x1b3   :  { %v213_v49 = vadd.f32 %v406_v47, %v212_v48  ;;  %v480_v50 = vpop.f32.mrb[1].mxu1 }
 0x1b5   :  { %v216_v51 = vmax.f32 %v213_v49, 0.0 }
 0x1b7   :  { %506 = vmatmul.mubr.msk.f32.vlgmr.msra.gmra.mrb[2].mxu0 %vm142_vm5, %v216_v51 }
 0x28a   :  { %v305_v62 = vpop.f32.mrb[2].mxu0 }
 0x28b   :  { %v306_v63 = vadd.f32 %v408_v61, %v305_v62  ;;  %v507_v1 = vpop.f32.mrb[3].mxu0 }
 0x28d   :  { %576 = vtanh.f32 %v306_v63 }
 0x297   :  { %v577_v3 = vpop.eup %576 }
 0x298   :  { %311 = vst.msk [vmem:[%s787_s10] sm:$0xff] %vm310_vm6, %v577_v3  ;;  %v313_v0 = vmul.f32 %v577_v3, %v312_v2 }
 0x29a   :  { %521 = vmatmul.mubr.msk.f32.vlgmr.msra.gmra.mrb[2].mxu1 %vm310_vm6, %v313_v0 }
 0x36d   :  { %v389_v4 = vpop.f32.mrb[2].mxu1 }
 0x36e   :  { %394 = vst.msk [vmem:[%s788_s9] sm:$0xff] %vm393_vm7, %v389_v4  ;;  %v522_v5 = vpop.f32.mrb[3].mxu1 }

</bundles_post_ra>
